<compile_context>
chip_gen: v7x
topology: tpu7x:2x2x1
jax: 0.10.0
libtpu: 0.0.40
codegen_flags: <defaults>
</compile_context>

<pallas_src>
import functools

import jax
import jax.numpy as jnp
from jax.experimental import pallas as pl
from jax.experimental.pallas import tpu as pltpu

_MIB = 1024 * 1024


def _round_up(a, b):
    return (a + b - 1) // b * b


def _cdiv(a, b):
    return (a + b - 1) // b


def _vmem_budget():
    """Returns (physical VMEM bytes per core, usable budget for this kernel)."""
    phys = None
    try:
        info = pltpu.get_tpu_info()
        phys = int(getattr(info, "vmem_capacity_bytes", 0)) or None
    except Exception:
        phys = None
    if phys is None:
        # Unknown generation: stay conservative (valid even on v7x's 64 MiB/TC).
        return 64 * _MIB, 48 * _MIB
    if phys <= 64 * _MIB:                       # v7x: 64 MiB per TensorCore
        return phys, 48 * _MIB
    return phys, min(100 * _MIB, phys - 16 * _MIB)   # v5e / v6e: 128 MiB


# ----------------------------------------------------------------------------
# Kernel bodies
# ----------------------------------------------------------------------------
def _kernel_single_k(x_ref, h_ref, wx_ref, wh_ref, bz_ref, br_ref, out_ref):
    """Fully-resident weights (common case). 1-D grid over row tiles.

    x_ref, h_ref : (tm, d_pad)    input dtype (cast to compute dtype in-kernel)
    wx_ref       : (d_pad, 2*d_pad) fused [Wzx | Wr^T]
    wh_ref       : (d_pad, d_pad)   Wzh
    bz/br        : (1, d_pad) f32
    No VMEM accumulators: output tile is written exactly once.
    """
    d_pad = wh_ref.shape[-1]
    cdt = wx_ref.dtype
    h_f32 = h_ref[...].astype(jnp.float32)            # carry path stays f32
    xw = jnp.dot(x_ref[...].astype(cdt), wx_ref[...],
                 preferred_element_type=jnp.float32)  # one wide MXU pass (z|r)
    hw = jnp.dot(h_ref[...].astype(cdt), wh_ref[...],
                 preferred_element_type=jnp.float32)
    z = jax.nn.sigmoid(xw[:, :d_pad] + hw + bz_ref[...])   # EUP
    r = jnp.tanh(xw[:, d_pad:] + br_ref[...])               # EUP
    # z*h + (1-z)*r == r + z*(h - r)
    out_ref[...] = (r + z * (h_f32 - r)).astype(out_ref.dtype)


def _kernel_multi_k(x_ref, h_ref, wx_ref, wh_ref, bz_ref, br_ref, out_ref,
                    accz_ref, accr_ref, *, n_k, tk):
    """Weight-streaming path. Grid = (row tiles i, reduction tiles k).

    x_ref : (tm, tk) K slab.  h_ref : (tm, d_pad) full-row resident block,
    DMA'd once per row tile; its K slab is taken in-kernel with static,
    128-aligned slices under pl.when(k == j) (no lane-dim dynamic indexing).
    k == 0 stores directly into the accumulators (no zero-init pass).
    """
    k = pl.program_id(1)
    d_pad = wh_ref.shape[-1]
    cdt = wx_ref.dtype

    xw = jnp.dot(x_ref[...].astype(cdt), wx_ref[...],
                 preferred_element_type=jnp.float32)
    z_part = xw[:, :d_pad]
    r_part = xw[:, d_pad:]

    for j in range(n_k):
        @pl.when(k == j)
        def _(j=j):
            h_k = h_ref[:, j * tk:(j + 1) * tk].astype(cdt)
            hw = jnp.dot(h_k, wh_ref[...], preferred_element_type=jnp.float32)
            if j == 0:
                accz_ref[...] = z_part + hw
                accr_ref[...] = r_part
            else:
                accz_ref[...] += z_part + hw
                accr_ref[...] += r_part

    @pl.when(k == n_k - 1)
    def _finalize():
        z = jax.nn.sigmoid(accz_ref[...] + bz_ref[...])
        r = jnp.tanh(accr_ref[...] + br_ref[...])
        h_f32 = h_ref[...].astype(jnp.float32)
        out_ref[...] = (r + z * (h_f32 - r)).astype(out_ref.dtype)


# ----------------------------------------------------------------------------
# One-time parameter preparation (hoisted out of the per-call path)
# ----------------------------------------------------------------------------
def prepare_gated_feedback_params(wz, bz, wr, br, *, compute_dtype=None):
    """wz: [d, 2d] (nn.Linear(2d, d).weight, out x in); wr: [d, d]; bz, br: [d].

    One-time prep: transpose to matmul layout, split Wz into its x / h halves,
    fuse the two x-side RHS into one [d_pad, 2*d_pad] slab, zero-pad to lane
    multiples of 128, cast weights to `compute_dtype`.  bf16 is recommended on
    all TPU generations (v5e's MXU is bf16-native too); accumulation, biases
    and the gate combine stay f32.  Call once and reuse.
    """
    d = wr.shape[0]
    assert wz.shape == (d, 2 * d) and wr.shape == (d, d)
    assert bz.shape == (d,) and br.shape == (d,)
    d_pad = _round_up(d, 128)
    if compute_dtype is None:
        compute_dtype = wz.dtype

    wz_t = wz.T.astype(compute_dtype)       # [2d, d]
    wzx = wz_t[:d, :]                       # acts on x  -> z pre-activation
    wzh = wz_t[d:, :]                       # acts on h  -> z pre-activation
    wr_t = wr.T.astype(compute_dtype)       # acts on x  -> r pre-activation

    def pad2(w):
        return jnp.pad(w, ((0, d_pad - d), (0, d_pad - d)))

    wx = jnp.concatenate([pad2(wzx), pad2(wr_t)], axis=1)   # [d_pad, 2*d_pad]
    wh = pad2(wzh)                                          # [d_pad, d_pad]
    bz_p = jnp.pad(bz.astype(jnp.float32), (0, d_pad - d)).reshape(1, d_pad)
    br_p = jnp.pad(br.astype(jnp.float32), (0, d_pad - d)).reshape(1, d_pad)
    return dict(wx=wx, wh=wh, bz=bz_p, br=br_p, d=d, d_pad=d_pad,
                compute_dtype=jnp.dtype(compute_dtype))


# ----------------------------------------------------------------------------
# pallas_call wrapper
# ----------------------------------------------------------------------------
def gated_feedback(x, h, prepared, *, tm=None, tk=None):
    """x, h: [M, d_model].  `prepared` comes from prepare_gated_feedback_params."""
    M, d = x.shape
    assert h.shape == (M, d)
    assert h.dtype == x.dtype, "x and h must share a dtype"
    assert prepared["d"] == d
    d_pad = int(prepared["d_pad"])
    cdtype = prepared["compute_dtype"]
    out_dtype = x.dtype

    in_isz = jnp.dtype(x.dtype).itemsize
    w_isz = jnp.dtype(cdtype).itemsize
    out_isz = jnp.dtype(out_dtype).itemsize

    vmem_phys, vmem_budget = _vmem_budget()

    # Sublane alignment for the compute dtype (bf16 packs 2 rows per sublane).
    align = {4: 8, 2: 16, 1: 32}.get(w_isz, 8)

    def est_vmem(tm_, tk_, multi):
        e = (2 * tm_ * tk_ * in_isz            # x blocks (double-buffered)
             + 2 * tm_ * d_pad * in_isz        # h full-row blocks
             + 2 * 3 * tk_ * d_pad * w_isz     # wx + wh slabs
             + 2 * 2 * d_pad * 4               # f32 biases
             + 2 * tm_ * d_pad * out_isz       # output tiles
             + 4 * tm_ * d_pad * 4)            # compiler temporaries (xw/hw/z/r)
        if multi:
            e += 2 * tm_ * d_pad * 4           # f32 accumulators (scratch)
        return e

    # ---- row tile ------------------------------------------------------------
    user_tm = tm is not None
    tm = 256 if tm is None else tm
    tm = max(align, (min(tm, _round_up(M, align)) // align) * align)
    # Megacore / v7x (2 TCs): keep at least two row tiles when M allows.
    if _cdiv(M, tm) < 2 and M > align:
        tm = max(align, _round_up(_cdiv(M, 2), align))

    # ---- reduction tile --------------------------------------------------------
    if tk is None:
        if est_vmem(tm, d_pad, multi=False) <= vmem_budget:
            tk = d_pad                 # fully-resident weights: the fast path
        else:
            # K streaming: largest 128-multiple divisor of d_pad that fits
            # (large tk keeps the 256-deep v6e/v7x MXUs filled).
            tk = 128
            for t in range(d_pad, 0, -128):
                if d_pad % t == 0 and est_vmem(tm, t, multi=True) <= vmem_budget:
                    tk = t
                    break
    else:
        tk = min(tk, d_pad)
        tk = max(128, (tk // 128) * 128)
        while d_pad % tk:
            tk -= 128
    n_k = d_pad // tk

    # Streaming regime: weight HBM traffic ~ (M/tm)*3*d_pad*tk, so raise tm
    # (v5e/v6e cap 512, v7x cap 256) without collapsing below 2 row tiles.
    if n_k > 1 and not user_tm:
        tm_cap = 512 if vmem_phys > 64 * _MIB else 256
        if M > align:
            tm_cap = min(tm_cap, max(align, _round_up(_cdiv(M, 2), align)))
        else:
            tm_cap = min(tm_cap, max(align, _round_up(M, align)))
        while tm * 2 <= tm_cap and est_vmem(tm * 2, tk, True) <= vmem_budget:
            tm *= 2

    m_pad = _round_up(M, tm)

    # ---- inputs: pad only when required; dtype cast happens in-kernel ---------
    if m_pad != M or d_pad != d:
        x_in = jnp.pad(x, ((0, m_pad - M), (0, d_pad - d)))
        h_in = jnp.pad(h, ((0, m_pad - M), (0, d_pad - d)))
    else:
        x_in, h_in = x, h

    args = (x_in, h_in, prepared["wx"], prepared["wh"],
            prepared["bz"], prepared["br"])

    if n_k == 1:
        grid = (m_pad // tm,)
        in_specs = [
            pl.BlockSpec((tm, d_pad), lambda i: (i, 0)),            # x
            pl.BlockSpec((tm, d_pad), lambda i: (i, 0)),            # h
            pl.BlockSpec((d_pad, 2 * d_pad), lambda i: (0, 0)),     # wx (resident)
            pl.BlockSpec((d_pad, d_pad), lambda i: (0, 0)),         # wh (resident)
            pl.BlockSpec((1, d_pad), lambda i: (0, 0)),             # bz
            pl.BlockSpec((1, d_pad), lambda i: (0, 0)),             # br
        ]
        out_spec = pl.BlockSpec((tm, d_pad), lambda i: (i, 0))
        scratch_shapes = []
        kernel = _kernel_single_k
        dims = ("parallel",)
    else:
        grid = (m_pad // tm, n_k)
        in_specs = [
            pl.BlockSpec((tm, tk), lambda i, k: (i, k)),            # x K slab
            pl.BlockSpec((tm, d_pad), lambda i, k: (i, 0)),         # h full row
            pl.BlockSpec((tk, 2 * d_pad), lambda i, k: (k, 0)),     # wx slab
            pl.BlockSpec((tk, d_pad), lambda i, k: (k, 0)),         # wh slab
            pl.BlockSpec((1, d_pad), lambda i, k: (0, 0)),          # bz
            pl.BlockSpec((1, d_pad), lambda i, k: (0, 0)),          # br
        ]
        out_spec = pl.BlockSpec((tm, d_pad), lambda i, k: (i, 0))
        scratch_shapes = [pltpu.VMEM((tm, d_pad), jnp.float32),
                          pltpu.VMEM((tm, d_pad), jnp.float32)]
        kernel = functools.partial(_kernel_multi_k, n_k=n_k, tk=tk)
        dims = ("parallel", "arbitrary")

    est = est_vmem(tm, tk, n_k > 1)
    vmem_limit = int(min(max(int(est * 1.25), 32 * _MIB), vmem_budget))

    out = pl.pallas_call(
        kernel,
        out_shape=jax.ShapeDtypeStruct((m_pad, d_pad), out_dtype),
        grid_spec=pltpu.PrefetchScalarGridSpec(
            num_scalar_prefetch=0,
            grid=grid,
            in_specs=in_specs,
            out_specs=out_spec,
            scratch_shapes=scratch_shapes,
        ),
        compiler_params=pltpu.CompilerParams(
            dimension_semantics=dims,
            vmem_limit_bytes=vmem_limit,
        ),
    )(*args)

    if m_pad != M or d_pad != d:
        out = out[:M, :d]
    return out


def gated_feedback_module(x, h, prepared, *, tm=None, tk=None):
    """x, h: [B, L, d_model] — same layout as the PyTorch module."""
    B, L, d = x.shape
    out = gated_feedback(x.reshape(B * L, d), h.reshape(B * L, d),
                         prepared, tm=tm, tk=tk)
    return out.reshape(B, L, d)


def _reference(x, h, params):
    cat = jnp.concatenate([x, h], axis=-1)
    z = jax.nn.sigmoid(cat @ params["wz"].T + params["bz"])
    r = jnp.tanh(x @ params["wr"].T + params["br"])
    return z * h + (1.0 - z) * r


if __name__ == "__main__":
    # --- small shapes consistent with the module ------------------------------
    d_model, B, L = 32, 2, 8
    key = jax.random.PRNGKey(0)
    k_x, k_h, k_wz, k_bz, k_wr, k_br = jax.random.split(key, 6)
    x = jax.random.normal(k_x, (B, L, d_model), jnp.float32)
    h = jax.random.normal(k_h, (B, L, d_model), jnp.float32)
    params = {
        "wz": jax.random.normal(k_wz, (d_model, 2 * d_model), jnp.float32) * 0.1,
        "bz": jax.random.normal(k_bz, (d_model,), jnp.float32) * 0.1,
        "wr": jax.random.normal(k_wr, (d_model, d_model), jnp.float32) * 0.1,
        "br": jax.random.normal(k_br, (d_model,), jnp.float32) * 0.1,
    }
    ref = _reference(x, h, params)

    # f32 path (exact vs reference), single-K fast path, d padded 32 -> 128.
    prep_f32 = prepare_gated_feedback_params(params["wz"], params["bz"],
                                             params["wr"], params["br"])
    out = jax.block_until_ready(gated_feedback_module(x, h, prep_f32))
    assert out.shape == (B, L, d_model)
    assert jnp.allclose(out, ref, atol=1e-5, rtol=1e-5), "f32 mismatch vs reference"

    # bf16 matmul path (recommended on all generations); f32 accumulate/gating,
    # h stays f32 in the carry path.
    prep_bf16 = prepare_gated_feedback_params(params["wz"], params["bz"],
                                              params["wr"], params["br"],
                                              compute_dtype=jnp.bfloat16)
    out_bf16 = jax.block_until_ready(gated_feedback_module(x, h, prep_bf16))
    assert jnp.allclose(out_bf16, ref, atol=5e-2, rtol=5e-2), "bf16 mismatch vs reference"

    # K-streaming (multi-K) path: d_pad = 256, forced tk = 128 -> 2 K steps;
    # also exercises the zero-copy (no pad / no slice) input/output path.
    d2, M2 = 256, 128
    k2 = jax.random.split(jax.random.PRNGKey(1), 6)
    x2 = jax.random.normal(k2[0], (M2, d2), jnp.float32)
    h2 = jax.random.normal(k2[1], (M2, d2), jnp.float32)
    params2 = {
        "wz": jax.random.normal(k2[2], (d2, 2 * d2), jnp.float32) * 0.05,
        "bz": jax.random.normal(k2[3], (d2,), jnp.float32) * 0.05,
        "wr": jax.random.normal(k2[4], (d2, d2), jnp.float32) * 0.05,
        "br": jax.random.normal(k2[5], (d2,), jnp.float32) * 0.05,
    }
    prep2 = prepare_gated_feedback_params(params2["wz"], params2["bz"],
                                          params2["wr"], params2["br"])
    out2 = jax.block_until_ready(gated_feedback(x2, h2, prep2, tk=128))
    ref2 = _reference(x2, h2, params2)
    assert jnp.allclose(out2, ref2, atol=1e-4, rtol=1e-4), "multi-K mismatch vs reference"

    # Row-padding-only path (d % 128 == 0, M not a multiple of tm).
    M3, d3 = 250, 128
    k3 = jax.random.split(jax.random.PRNGKey(2), 6)
    x3 = jax.random.normal(k3[0], (M3, d3), jnp.float32)
    h3 = jax.random.normal(k3[1], (M3, d3), jnp.float32)
    params3 = {
        "wz": jax.random.normal(k3[2], (d3, 2 * d3), jnp.float32) * 0.05,
        "bz": jax.random.normal(k3[3], (d3,), jnp.float32) * 0.05,
        "wr": jax.random.normal(k3[4], (d3, d3), jnp.float32) * 0.05,
        "br": jax.random.normal(k3[5], (d3,), jnp.float32) * 0.05,
    }
    prep3 = prepare_gated_feedback_params(params3["wz"], params3["bz"],
                                          params3["wr"], params3["br"])
    out3 = jax.block_until_ready(gated_feedback(x3, h3, prep3))
    ref3 = _reference(x3, h3, params3)
    assert jnp.allclose(out3, ref3, atol=1e-4, rtol=1e-4), "row-pad mismatch vs reference"

    print("KERNEL_OK")
</pallas_src>

<mosaic_0001>
module attributes {stable_mosaic.version = 11 : i64} {
  func.func @_kernel_single_k(%arg0: i32, %arg1: memref<8x128xf32, #tpu.memory_space<vmem>>, %arg2: memref<8x128xf32, #tpu.memory_space<vmem>>, %arg3: memref<128x256xf32, #tpu.memory_space<vmem>>, %arg4: memref<128x128xf32, #tpu.memory_space<vmem>>, %arg5: memref<1x128xf32, #tpu.memory_space<vmem>>, %arg6: memref<1x128xf32, #tpu.memory_space<vmem>>, %arg7: memref<8x128xf32, #tpu.memory_space<vmem>>) attributes {dimension_semantics = [#tpu.dimension_semantics<parallel>], iteration_bounds = array<i64: 2>, scalar_prefetch = 0 : i64, scratch_operands = 0 : i64, tpu.core_type = #tpu.core_type<tc>, window_params = [{transform_indices = @transform_0, window_bounds = array<i64: 8, 128>}, {transform_indices = @transform_1, window_bounds = array<i64: 8, 128>}, {pipeline_mode = #tpu.pipeline_mode<synchronous>, transform_indices = @transform_2, window_bounds = array<i64: 128, 256>}, {pipeline_mode = #tpu.pipeline_mode<synchronous>, transform_indices = @transform_3, window_bounds = array<i64: 128, 128>}, {pipeline_mode = #tpu.pipeline_mode<synchronous>, transform_indices = @transform_4, window_bounds = array<i64: 1, 128>}, {pipeline_mode = #tpu.pipeline_mode<synchronous>, transform_indices = @transform_5, window_bounds = array<i64: 1, 128>}, {transform_indices = @transform_6, window_bounds = array<i64: 8, 128>}]} {
    %c0 = arith.constant 0 : index
    %c0_0 = arith.constant 0 : index
    %0 = vector.load %arg2[%c0, %c0_0] : memref<8x128xf32, #tpu.memory_space<vmem>>, vector<8x128xf32>
    %c0_1 = arith.constant 0 : index
    %c0_2 = arith.constant 0 : index
    %1 = vector.load %arg1[%c0_1, %c0_2] : memref<8x128xf32, #tpu.memory_space<vmem>>, vector<8x128xf32>
    %c0_3 = arith.constant 0 : index
    %c0_4 = arith.constant 0 : index
    %2 = vector.load %arg3[%c0_3, %c0_4] : memref<128x256xf32, #tpu.memory_space<vmem>>, vector<128x256xf32>
    %cst = arith.constant dense<0.000000e+00> : vector<8x256xf32>
    %3 = tpu.matmul %1, %2, %cst {dimension_numbers = #tpu.dot_dimension_numbers<[1], [0], [0], [1], [0, 0, 1, 1], [], []>} : vector<8x128xf32>, vector<128x256xf32>, vector<8x256xf32> -> vector<8x256xf32>
    %c0_5 = arith.constant 0 : index
    %c0_6 = arith.constant 0 : index
    %4 = vector.load %arg2[%c0_5, %c0_6] : memref<8x128xf32, #tpu.memory_space<vmem>>, vector<8x128xf32>
    %c0_7 = arith.constant 0 : index
    %c0_8 = arith.constant 0 : index
    %5 = vector.load %arg4[%c0_7, %c0_8] : memref<128x128xf32, #tpu.memory_space<vmem>>, vector<128x128xf32>
    %cst_9 = arith.constant dense<0.000000e+00> : vector<8x128xf32>
    %6 = tpu.matmul %4, %5, %cst_9 {dimension_numbers = #tpu.dot_dimension_numbers<[1], [0], [0], [1], [0, 0, 1, 1], [], []>} : vector<8x128xf32>, vector<128x128xf32>, vector<8x128xf32> -> vector<8x128xf32>
    %7 = vector.extract_strided_slice %3 {offsets = [0, 0], sizes = [8, 128], strides = [1, 1]} : vector<8x256xf32> to vector<8x128xf32>
    %8 = arith.addf %7, %6 : vector<8x128xf32>
    %c0_10 = arith.constant 0 : index
    %c0_11 = arith.constant 0 : index
    %9 = vector.load %arg5[%c0_10, %c0_11] : memref<1x128xf32, #tpu.memory_space<vmem>>, vector<1x128xf32>
    %10 = vector.broadcast %9 : vector<1x128xf32> to vector<8x128xf32>
    %11 = arith.addf %8, %10 : vector<8x128xf32>
    %12 = arith.negf %11 : vector<8x128xf32>
    %13 = math.exp %12 : vector<8x128xf32>
    %cst_12 = arith.constant 1.000000e+00 : f32
    %14 = vector.broadcast %cst_12 : f32 to vector<8x128xf32>
    %15 = arith.addf %14, %13 : vector<8x128xf32>
    %16 = arith.divf %14, %15 : vector<8x128xf32>
    %17 = vector.extract_strided_slice %3 {offsets = [0, 128], sizes = [8, 128], strides = [1, 1]} : vector<8x256xf32> to vector<8x128xf32>
    %c0_13 = arith.constant 0 : index
    %c0_14 = arith.constant 0 : index
    %18 = vector.load %arg6[%c0_13, %c0_14] : memref<1x128xf32, #tpu.memory_space<vmem>>, vector<1x128xf32>
    %19 = vector.broadcast %18 : vector<1x128xf32> to vector<8x128xf32>
    %20 = arith.addf %17, %19 : vector<8x128xf32>
    %21 = math.tanh %20 : vector<8x128xf32>
    %22 = arith.subf %0, %21 : vector<8x128xf32>
    %23 = arith.mulf %16, %22 : vector<8x128xf32>
    %24 = arith.addf %21, %23 : vector<8x128xf32>
    %c0_15 = arith.constant 0 : index
    %c0_16 = arith.constant 0 : index
    %25 = vector.load %arg7[%c0_15, %c0_16] : memref<8x128xf32, #tpu.memory_space<vmem>>, vector<8x128xf32>
    tpu.vector_store %arg7[%c0_15, %c0_16], %24 {strides = array<i32>} : memref<8x128xf32, #tpu.memory_space<vmem>>, vector<8x128xf32>,
    return
  }
  func.func @transform_0(%arg0: i32) -> (i32, i32) {
    %c0_i32 = arith.constant 0 : i32
    %c0_i32_0 = arith.constant 0 : i32
    return %arg0, %c0_i32 : i32, i32
  }
  func.func @transform_1(%arg0: i32) -> (i32, i32) {
    %c0_i32 = arith.constant 0 : i32
    %c0_i32_0 = arith.constant 0 : i32
    return %arg0, %c0_i32 : i32, i32
  }
  func.func @transform_2(%arg0: i32) -> (i32, i32) {
    %c0_i32 = arith.constant 0 : i32
    %c0_i32_0 = arith.constant 0 : i32
    %c0_i32_1 = arith.constant 0 : i32
    return %c0_i32, %c0_i32_0 : i32, i32
  }
  func.func @transform_3(%arg0: i32) -> (i32, i32) {
    %c0_i32 = arith.constant 0 : i32
    %c0_i32_0 = arith.constant 0 : i32
    %c0_i32_1 = arith.constant 0 : i32
    return %c0_i32, %c0_i32_0 : i32, i32
  }
  func.func @transform_4(%arg0: i32) -> (i32, i32) {
    %c0_i32 = arith.constant 0 : i32
    %c0_i32_0 = arith.constant 0 : i32
    %c0_i32_1 = arith.constant 0 : i32
    return %c0_i32, %c0_i32_0 : i32, i32
  }
  func.func @transform_5(%arg0: i32) -> (i32, i32) {
    %c0_i32 = arith.constant 0 : i32
    %c0_i32_0 = arith.constant 0 : i32
    %c0_i32_1 = arith.constant 0 : i32
    return %c0_i32, %c0_i32_0 : i32, i32
  }
  func.func @transform_6(%arg0: i32) -> (i32, i32) {
    %c0_i32 = arith.constant 0 : i32
    %c0_i32_0 = arith.constant 0 : i32
    return %arg0, %c0_i32 : i32, i32
  }
}

</mosaic_0001>

<bundles_post_ra>
// kernel: tpu_custom_call.1
= control target key start
LH: loop header
LB: loop body
LE: loop exit
PB: predicated region body
PF: predicated region fallthrough
CT: control target
= control target key end

     0   :  { %s1428_s0 = inlined_call_operand.hbm [shape: f32[16,128], index: 0, kind: input, shape index: {}]   ;;  %s1429_s1 = inlined_call_operand.hbm [shape: f32[16,128], index: 1, kind: input, shape index: {}]   ;;  %s1430_s2 = inlined_call_operand.hbm [shape: f32[128,256], index: 2, kind: input, shape index: {}]   ;;  %s1431_s3 = inlined_call_operand.hbm [shape: f32[128,128], index: 3, kind: input, shape index: {}]   ;;  %s1432_s4 = inlined_call_operand.vmem [shape: f32[1,128], index: 4, kind: input, shape index: {}]   ;;  %s1433_s5 = inlined_call_operand.vmem [shape: f32[1,128], index: 5, kind: input, shape index: {}]   ;;  %s1434_s6 = inlined_call_operand.hbm [shape: f32[16,128], index: 6, kind: output, shape index: {}]  }
   0x1   :  { %1439 = sst [smem:[#allocation17_spill]] %s1430_s2 }
   0x2   :  { %1440 = sst [smem:[#allocation18_spill]] %s1431_s3 }
   0x3   :  { %11 = vsyncpa [#allocation3], 0 }
   0x4   :  { %13 = vsyncpa [#allocation3 + $0x1], 0 }
   0x5   :  { %14 = vsyncpa [#allocation6], 0 }
   0x6   :  { %16 = vsyncpa [#allocation6 + $0x1], 0 }
   0x7   :  { %17 = vsyncpa [#allocation9], 0 }
   0x8   :  { %18 = vsyncpa [#allocation4], 0 }
   0x9   :  { %20 = vsyncpa [#allocation4 + $0x1], 0  ;;  %s1136_s21 = smov 0   ;;  %s1138_s22 = smov 0  }
   0xa   :  { %s1140_s23 = smov 0   ;;  %s1142_s24 = smov 0  }
   0xb LB: > { %s1157_s25 = sadd.s32 4294967295, %s1087_s24   ;;  %s678_s26 = sadd.s32 4294967294, %s1087_s24   ;;  %s1087_s24 = sphi %s1142_s24, %s1464_s24   ;;  %s1083_s23 = sphi %s1140_s23, %s1463_s23   ;;  %s1079_s22 = sphi %s1138_s22, %s1462_s22   ;;  %s1075_s21 = sphi %s1136_s21, %s1461_s21  }
   0xc   : > { %p46_p0 = scmp.ne.s32.totalorder %s1079_s22, %s1075_s21  ;;  %p1435_p1 = scmp.eq.s32.totalorder %s1157_s25, 0 }
   0xd   : > { %p186_p3 = scmp.eq.s32.totalorder %s678_s26, 1  ;;  %p679_p5 = scmp.ge.s32.totalorder %s1087_s24, 1 }
   0xe   : > { %p1166_p4 = por %p1435_p1, %p46_p0  ;;  %p193_p7 = scmp.lt.s32.totalorder %s1087_s24, 3 }
   0xf   : > { %p1171_p6 = por %p186_p3, %p46_p0  ;;  %s1089_s30 = smov [#allocation7]  }
  0x10   : > { %s1441_s27 = scalar_select %p1166_p4, 1, 0 }
  0x11   : > { %s1442_s28 = scalar_select %p1171_p6, 1, 0 }
  0x12   : > { %p1176_p8 = pnand %p679_p5, %p193_p7  ;;  %s205_s7 = sshll.u32 %s1089_s30, 4  ;;  %s1180_s7 = int_to_ptr.vmem [resolvable:$true] %s205_s7 }
  0x13   : > { %s1090_s9 = smov [#allocation8]   ;;  %s1445_s2 = sld [smem:[#allocation17_spill]] }
  0x14   : > { %s1443_s29 = scalar_select %p1176_p8, 1, 0 }
  0x15   : > { %p822_p9 = pneg %p1176_p8  ;;  %s218_s10 = sshll.u32 %s1090_s9, 4  ;;  %s1191_s10 = int_to_ptr.vmem [resolvable:$true] %s218_s10 }
  0x17   : > { %p1187_p11 = pnand %p822_p9, %p1435_p1 }
  0x19   : > { %s893_s13 = scalar_lea.hbm %s1445_s2, 4096  ;;  %p895_p13 = pneg %p1187_p11 }
  0x1a   : > { %p894_p12 = scmp.ne.s32.totalorder %s1445_s2, %s893_s13  ;;  %p900_p5 = scmp.lt.u32.totalorder %s893_s13, %s1445_s2 }
  0x1c   : > { %p896_p0 = pnand %p895_p13, %p894_p12 }
  0x1e   : > { %p897_p3 = pneg %p896_p0 }
  0x20   : > { %p902_p7 = pnand %p900_p5, %p897_p3 }
  0x22   : > { %905 = shalt.err (!%p902_p7)
}
  0x23   : > { %s906_s18 = scalar_lea.vmem %s1180_s7, 4096  ;;  %p914_p2 = scmp.lt.s32.totalorder %s1180_s7, %s1180_s7 }
  0x24   : > { %p907_p9 = scmp.ne.s32.totalorder %s1180_s7, %s906_s18  ;;  %p915_p12 = scmp.lt.s32.totalorder %s906_s18, %s906_s18 }
  0x26   : > { %p909_p10 = pnand %p907_p9, %p895_p13  ;;  %p916_p0 = por %p915_p12, %p914_p2 }
  0x28   : > { %p910_p1 = pneg %p909_p10 }
  0x2a   : > { %p917_p6 = pnand %p916_p0, %p910_p1 }
  0x2c   : > { %920 = shalt.err (!%p917_p6)
}
  0x2d   : > { %s1091_s19 = smov 256   ;;  %s1092_s20 = smov 16  }
  0x2e   : > { %825 = dma.hbm_to_vmem [thread:$0]  (!%p1187_p11), %s1445_s2, 4096, %s1180_s7, [#allocation6], %s1091_s19, %s1091_s19, %s1092_s20  }
  0x2f   : > { %s1446_s3 = sld [smem:[#allocation18_spill]] }
  0x35   : > { %s921_s12 = scalar_lea.hbm %s1446_s3, 2048 }
  0x36   : > { %p922_p2 = scmp.ne.s32.totalorder %s1446_s3, %s921_s12  ;;  %p928_p10 = scmp.lt.u32.totalorder %s921_s12, %s1446_s3 }
  0x38   : > { %p924_p1 = pnand %p922_p2, %p895_p13 }
  0x3a   : > { %p925_p6 = pneg %p924_p1 }
  0x3c   : > { %p930_p3 = pnand %p928_p10, %p925_p6 }
  0x3e   : > { %933 = shalt.err (!%p930_p3)
}
  0x3f   : > { %s934_s7 = scalar_lea.vmem %s1191_s10, 2048  ;;  %p942_p12 = scmp.lt.s32.totalorder %s1191_s10, %s1191_s10 }
  0x40   : > { %p935_p5 = scmp.ne.s32.totalorder %s1191_s10, %s934_s7  ;;  %p943_p0 = scmp.lt.s32.totalorder %s934_s7, %s934_s7 }
  0x42   : > { %p937_p7 = pnand %p935_p5, %p895_p13  ;;  %p944_p2 = por %p943_p0, %p942_p12 }
  0x44   : > { %p938_p9 = pneg %p937_p7 }
  0x46   : > { %p945_p1 = pnand %p944_p2, %p938_p9 }
  0x48   : > { %948 = shalt.err (!%p945_p1)
}
  0x49   : > { %s1093_s17 = smov 128   ;;  %s1094_s18 = smov 8  }
  0x4a   : > { %828 = dma.hbm_to_vmem [thread:$0]  (!%p1187_p11), %s1446_s3, 2048, %s1191_s10, [#allocation9], %s1093_s17, %s1093_s17, %s1094_s18  }
  0x4b   : > { %s1246_s26 = sadd.s32 1, %s1087_s24   ;;  %s33_s9 = sadd.s32 1, %s1083_s23 }
  0x4c   : > { %s30_s30 = ssub.s32 %s1087_s24, %s1246_s26  ;;  %p40_p6 = scmp.ne.s32.totalorder %s1083_s23, %s1079_s22 }
  0x4d   : > { %p31_p13 = scmp.eq.s32.totalorder %s30_s30, 0  ;;  %p41_p10 = scmp.eq.s32.totalorder %s1087_s24, 0 }
  0x4e   : > { %p1448_p5 = scmp.eq.s32.totalorder %s1157_s25, 1  ;;  %p842_p9 = scmp.lt.s32.totalorder %s1087_s24, 2 }
  0x4f   : > { %s1255_s11 = scalar_select %p31_p13, %s1083_s23, %s33_s9  }
  0x50   : > { %p42_p3 = por %p41_p10, %p40_p6  ;;  %p1259_p7 = por %p1448_p5, %p40_p6 }
  0x51   : > { %1447 = sst [smem:[#allocation16_spill]] %s1255_s11  ;;  %s238_s8 = sand.u32 1, %s1083_s23  }
  0x52   : > { %s1449_s12 = scalar_select %p1259_p7, 1, 0 }
  0x53   : > { %s1265_s10 = sshll.u32 %s238_s8, 3  ;;  %s684_s13 = sshll.u32 %s1087_s24, 7 }
  0x54   : > { %s1271_s16 = scalar_lea.hbm %s1428_s0, %s684_s13  ;;  %s242_s7 = scalar_lea.vmem [#allocation2], %s1265_s10 }
  0x55   : > { %s249_s17 = sshll.u32 %s242_s7, 4  ;;  %p1276_p11 = pnand %p842_p9, %p42_p3  ;;  %s1274_s17 = int_to_ptr.vmem [resolvable:$true] %s249_s17 }
  0x56   : > { %s1283_s30 = scalar_lea.hbm %s1429_s1, %s684_s13  ;;  %s256_s9 = sand.u32 1, %s1087_s24  }
  0x57   : > { %s239_s14 = scalar_lea.sflag [#allocation3], %s238_s8  ;;  %s949_s15 = scalar_lea.hbm %s1271_s16, 128 }
  0x58   : > { %p950_p12 = scmp.ne.s32.totalorder %s1271_s16, %s949_s15  ;;  %p951_p0 = pneg %p1276_p11 }
  0x59   : > { %s954_s3 = scalar_lea.hbm %s1428_s0, 256  ;;  %p955_p13 = scmp.lt.u32.totalorder %s1271_s16, %s1428_s0 }
  0x5a   : > { %p952_p2 = pnand %p951_p0, %p950_p12  ;;  %p956_p6 = scmp.lt.u32.totalorder %s954_s3, %s949_s15 }
  0x5b   : > { %p958_p3 = scmp.lt.u32.totalorder %s949_s15, %s1271_s16 }
  0x5c   : > { %p953_p1 = pneg %p952_p2  ;;  %p957_p10 = por %p956_p6, %p955_p13 }
  0x5e   : > { %p959_p5 = por %p958_p3, %p957_p10 }
  0x60   : > { %p960_p9 = pnand %p959_p5, %p953_p1 }
  0x62   : > { %963 = shalt.err (!%p960_p9)
}
  0x63   : > { %s964_s8 = scalar_lea.vmem %s1274_s17, 128  ;;  %s1095_s2 = smov [#allocation2]  }
  0x64   : > { %p965_p12 = scmp.ne.s32.totalorder %s1274_s17, %s964_s8  ;;  %s969_s13 = sshll.u32 %s1095_s2, 4  ;;  %s970_s13 = int_to_ptr.vmem [resolvable:$false] %s969_s13 }
  0x65   : > { %s971_s11 = scalar_lea.vmem %s970_s13, 256  ;;  %p972_p4 = scmp.lt.s32.totalorder %s1274_s17, %s970_s13 }
  0x66   : > { %p967_p2 = pnand %p965_p12, %p951_p0  ;;  %p973_p13 = scmp.lt.s32.totalorder %s971_s11, %s964_s8 }
  0x68   : > { %p968_p7 = pneg %p967_p2  ;;  %p974_p6 = por %p973_p13, %p972_p4 }
  0x6a   : > { %p975_p10 = pnand %p974_p6, %p968_p7 }
  0x6c   : > { %978 = shalt.err (!%p975_p10)
}
  0x6d   : > { %832 = dma.hbm_to_vmem [thread:$0]  (!%p1276_p11), %s1271_s16, 128, %s1274_s17, %s239_s14  }
  0x6e   : > { %s260_s3 = scalar_lea.vmem [#allocation5], %s1265_s10  ;;  %s257_s15 = scalar_lea.sflag [#allocation6], %s256_s9 }
  0x6f   : > { %s267_s20 = sshll.u32 %s260_s3, 4  ;;  %s979_s7 = scalar_lea.hbm %s1283_s30, 128  ;;  %s268_s20 = int_to_ptr.vmem [resolvable:$true] %s267_s20 }
  0x70   : > { %p980_p4 = scmp.ne.s32.totalorder %s1283_s30, %s979_s7  ;;  %s984_s2 = scalar_lea.hbm %s1429_s1, 256 }
  0x71   : > { %p985_p3 = scmp.lt.u32.totalorder %s1283_s30, %s1429_s1  ;;  %p986_p5 = scmp.lt.u32.totalorder %s984_s2, %s979_s7 }
  0x72   : > { %p982_p7 = pnand %p980_p4, %p951_p0  ;;  %p988_p12 = scmp.lt.u32.totalorder %s979_s7, %s1283_s30 }
  0x73   : > { %p987_p9 = por %p986_p5, %p985_p3 }
  0x74   : > { %p983_p1 = pneg %p982_p7 }
  0x75   : > { %p989_p2 = por %p988_p12, %p987_p9 }
  0x77   : > { %p990_p13 = pnand %p989_p2, %p983_p1 }
  0x79   : > { %993 = shalt.err (!%p990_p13)
}
  0x7a   : > { %s994_s10 = scalar_lea.vmem %s268_s20, 128  ;;  %s1096_s16 = smov [#allocation5]  }
  0x7b   : > { %p995_p6 = scmp.ne.s32.totalorder %s268_s20, %s994_s10  ;;  %s999_s17 = sshll.u32 %s1096_s16, 4  ;;  %s1000_s17 = int_to_ptr.vmem [resolvable:$false] %s999_s17 }
  0x7c   : > { %s1001_s9 = scalar_lea.vmem %s1000_s17, 256  ;;  %p1002_p7 = scmp.lt.s32.totalorder %s268_s20, %s1000_s17 }
  0x7d   : > { %p997_p10 = pnand %p995_p6, %p951_p0  ;;  %p1003_p8 = scmp.lt.s32.totalorder %s1001_s9, %s994_s10 }
  0x7f   : > { %p998_p4 = pneg %p997_p10  ;;  %p1004_p3 = por %p1003_p8, %p1002_p7 }
  0x81   : > { %p1005_p5 = pnand %p1004_p3, %p998_p4 }
  0x83   : > { %1008 = shalt.err (!%p1005_p5)
}
  0x84   : > { %835 = dma.hbm_to_vmem [thread:$0]  (!%p1276_p11), %s1283_s30, 128, %s268_s20, %s257_s15  }
  0x85   : > { %p1451_p1 = scmp.ne.s32.totalorder %s1443_s29, 0 }
  0x86   : > { %s1336_s14 = sand.u32 (!%p1451_p1), 1, %s1079_s22   ;;  %p1452_p8 = scmp.ne.s32.totalorder (!%p1451_p1), %s1441_s27, 0 }
  0x87   : > { %276 = sbr.rel (%p1451_p1) target bundleno = 449 (0x1c1), region = 44  ;;  %s1339_s3 = sshll.u32 (!%p1451_p1), %s1336_s14, 3 }
  0x88   : > { %s279_s7 = scalar_lea.sflag (!%p1451_p1), [#allocation3], %s1336_s14  ;;  %s282_s19 = scalar_lea.vmem (!%p1451_p1), [#allocation2], %s1339_s3 }
  0x8e   : > { %1054 = dma.done.wait (%p1452_p8), %s279_s7, 128  }
  0x8f   : > { %1056 = vsyncadd (%p1452_p8), %s279_s7, 4294967168  ;;  %s287_s29 = sand.u32 1, %s1157_s25   ;;  %s291_s30 = scalar_lea.vmem [#allocation5], %s1339_s3 }
  0x90   : > { %s288_s18 = scalar_lea.sflag [#allocation6], %s287_s29 }
  0x91   : > { %1058 = dma.done.wait (%p1452_p8), %s288_s18, 128  }
  0x92   : > { %1060 = vsyncadd (%p1452_p8), %s288_s18, 4294967168  ;;  %p1453_p11 = scmp.eq.s32.totalorder %s1157_s25, 0 }
  0x94   : > { %1062 = dma.done.wait (%p1453_p11), [#allocation6], 4096   ;;  %p1454_p0 = pmov %p1453_p11 }
  0x96   : > { %1064 = vsyncadd (%p1454_p0), [#allocation6], 4294963200  ;;  %p1455_p9 = pmov %p1454_p0 }
  0x97   : > { %p1456_p12 = pmov %p1454_p0 }
  0x98   : > { %1066 = dma.done.wait (%p1455_p9), [#allocation9], 2048  }
  0x99   : > { %1068 = vsyncadd (%p1456_p12), [#allocation9], 4294965248  ;;  %v1097_v0 = vmov 0.0|0.0   ;;  %vm1098_vm0 = vmmov 0   ;;  %v1099_v1 = vmov 0.0   ;;  %v336_v2 = vld [vmem:[#allocation7 + $0x8] sm:$0xff] }
  0x9a   : > { %784 = vmatprep.subr.bf16.mxu1 %v1097_v0  ;;  %749 = vmatprep.mubr.msk.f32.mxu1 %vm1098_vm0, %v1099_v1  ;;  %v338_v3 = vld [vmem:[#allocation7 + $0x18] sm:$0xff]  ;;  %v438_v4 = vld [vmem:[#allocation8] sm:$0xff]  ;;  %v439_v6 = vld [vmem:[#allocation8 + $0x8] sm:$0xff]  ;;  %s697_s2 = sshll.u32 %s1157_s25, 7  ;;  %s332_s13 = scalar_lea.vmem [#allocation10], %s1339_s3 }
  0x9b   : > { %431 = vmatprep.mubr.f32.mxu0 %v1099_v1  ;;  %v752_v5 = vpack.c.bf16 %v338_v3, %v336_v2  ;;  %v335_v7 = vld [vmem:[#allocation7] sm:$0xff]  ;;  %v337_v8 = vld [vmem:[#allocation7 + $0x10] sm:$0xff]  ;;  %v785_v9 = vpack.c.bf16 %v439_v6, %v438_v4  ;;  %v340_v11 = vld [vmem:[#allocation7 + $0x28] sm:$0xff]  ;;  %s566_s11 = sshll.u32 %s332_s13, 4  ;;  %s1384_s17 = scalar_lea.hbm %s1434_s6, %s697_s2  ;;  %s1386_s11 = int_to_ptr.vmem [resolvable:$true] %s566_s11 }
  0x9c   : > { %v754_v10 = vpack.c.bf16 %v337_v8, %v335_v7  ;;  %v342_v12 = vld [vmem:[#allocation7 + $0x38] sm:$0xff]  ;;  %v440_v13 = vld [vmem:[#allocation8 + $0x10] sm:$0xff]  ;;  %v339_v16 = vld [vmem:[#allocation7 + $0x20] sm:$0xff]  ;;  %s553_s9 = scalar_lea.sflag [#allocation4], %s1336_s14  ;;  %s1009_s7 = scalar_lea.vmem %s1386_s11, 128 }
  0x9d   : > { %753 = vmatprep.subr.bf16.mxu0 %v752_v5  ;;  %v756_v14 = vpack.c.bf16 %v342_v12, %v340_v11  ;;  %v441_v15 = vld [vmem:[#allocation8 + $0x18] sm:$0xff]  ;;  %v341_v17 = vld [vmem:[#allocation7 + $0x30] sm:$0xff]  ;;  %786 = vmatpush3.bf16.msra.mxu1 %v785_v9  ;;  %v344_v20 = vld [vmem:[#allocation7 + $0x48] sm:$0xff]  ;;  %p1010_p2 = scmp.ne.s32.totalorder %s1386_s11, %s1009_s7  ;;  %p1457_p13 = scmp.ne.s32.totalorder %s1449_s12, 0 }
  0x9e   : > { %755 = vmatpush1.bf16.msra.mxu0 %v754_v10  ;;  %v788_v18 = vpack.c.bf16 %v441_v15, %v440_v13  ;;  %v758_v19 = vpack.c.bf16 %v341_v17, %v339_v16  ;;  %v346_v21 = vld [vmem:[#allocation7 + $0x58] sm:$0xff]  ;;  %v442_v22 = vld [vmem:[#allocation8 + $0x20] sm:$0xff]  ;;  %787 = vmatprep.subr.bf16.mxu1 %v1097_v0  ;;  %v443_v24 = vld [vmem:[#allocation8 + $0x28] sm:$0xff]  ;;  %s1100_s25 = smov [#allocation10]  }
  0x9f   : > { %757 = vmatprep.subr.bf16.mxu0 %v756_v14  ;;  %v760_v23 = vpack.c.bf16 %v346_v21, %v344_v20  ;;  %v343_v25 = vld [vmem:[#allocation7 + $0x40] sm:$0xff]  ;;  %v345_v26 = vld [vmem:[#allocation7 + $0x50] sm:$0xff]  ;;  %v348_v27 = vld [vmem:[#allocation7 + $0x68] sm:$0xff]  ;;  %v791_v29 = vpack.c.bf16 %v443_v24, %v442_v22  ;;  %p1011_p6 = pnand %p1010_p2, %p1457_p13  ;;  %s1013_s3 = sshll.u32 %s1100_s25, 4  ;;  %s1014_s3 = int_to_ptr.vmem [resolvable:$false] %s1013_s3 }
  0xa0   : > { %v350_v28 = vld [vmem:[#allocation7 + $0x78] sm:$0xff]  ;;  %v762_v30 = vpack.c.bf16 %v345_v26, %v343_v25  ;;  %v444_v31 = vld [vmem:[#allocation8 + $0x30] sm:$0xff]  ;;  %v347_v34 = vld [vmem:[#allocation7 + $0x60] sm:$0xff]  ;;  %p1016_p4 = scmp.lt.s32.totalorder %s1386_s11, %s1014_s3 }
  0xa1   : > { %789 = vmatpush3.bf16.msra.mxu1 %v788_v18  ;;  %v764_v32 = vpack.c.bf16 %v350_v28, %v348_v27  ;;  %v445_v33 = vld [vmem:[#allocation8 + $0x38] sm:$0xff]  ;;  %v349_v35 = vld [vmem:[#allocation7 + $0x70] sm:$0xff]  ;;  %v352_v36 = vld [vmem:[#allocation7 + $0x88] sm:$0xff]  ;;  %p1012_p10 = pneg %p1011_p6 }
  0xa2   : > { %759 = vmatpush1.bf16.msra.mxu0 %v758_v19  ;;  %790 = vmatprep.subr.bf16.mxu1 %v1097_v0  ;;  %v354_v37 = vld [vmem:[#allocation7 + $0x98] sm:$0xff]  ;;  %v794_v38 = vpack.c.bf16 %v445_v33, %v444_v31  ;;  %v766_v39 = vpack.c.bf16 %v349_v35, %v347_v34  ;;  %v446_v40 = vld [vmem:[#allocation8 + $0x40] sm:$0xff]  ;;  %v447_v42 = vld [vmem:[#allocation8 + $0x48] sm:$0xff] }
  0xa3   : > { %761 = vmatprep.subr.bf16.mxu0 %v760_v23  ;;  %v768_v41 = vpack.c.bf16 %v354_v37, %v352_v36  ;;  %v351_v43 = vld [vmem:[#allocation7 + $0x80] sm:$0xff]  ;;  %v353_v44 = vld [vmem:[#allocation7 + $0x90] sm:$0xff]  ;;  %v356_v45 = vld [vmem:[#allocation7 + $0xa8] sm:$0xff]  ;;  %v797_v47 = vpack.c.bf16 %v447_v42, %v446_v40 }
  0xa4   : > { %v358_v46 = vld [vmem:[#allocation7 + $0xb8] sm:$0xff]  ;;  %v770_v48 = vpack.c.bf16 %v353_v44, %v351_v43  ;;  %v448_v49 = vld [vmem:[#allocation8 + $0x50] sm:$0xff]  ;;  %v355_v52 = vld [vmem:[#allocation7 + $0xa0] sm:$0xff] }
  0xa5   : > { %792 = vmatpush3.bf16.msra.mxu1 %v791_v29  ;;  %v772_v50 = vpack.c.bf16 %v358_v46, %v356_v45  ;;  %v449_v51 = vld [vmem:[#allocation8 + $0x58] sm:$0xff]  ;;  %v357_v53 = vld [vmem:[#allocation7 + $0xb0] sm:$0xff]  ;;  %v360_v54 = vld [vmem:[#allocation7 + $0xc8] sm:$0xff] }
  0xa6   : > { %763 = vmatpush1.bf16.msra.mxu0 %v762_v30  ;;  %793 = vmatprep.subr.bf16.mxu1 %v1097_v0  ;;  %v362_v55 = vld [vmem:[#allocation7 + $0xd8] sm:$0xff]  ;;  %v800_v56 = vpack.c.bf16 %v449_v51, %v448_v49  ;;  %v774_v57 = vpack.c.bf16 %v357_v53, %v355_v52  ;;  %v450_v58 = vld [vmem:[#allocation8 + $0x60] sm:$0xff]  ;;  %v451_v60 = vld [vmem:[#allocation8 + $0x68] sm:$0xff] }
  0xa7   : > { %765 = vmatprep.subr.bf16.mxu0 %v764_v32  ;;  %v776_v59 = vpack.c.bf16 %v362_v55, %v360_v54  ;;  %v359_v61 = vld [vmem:[#allocation7 + $0xc0] sm:$0xff]  ;;  %v361_v62 = vld [vmem:[#allocation7 + $0xd0] sm:$0xff]  ;;  %v364_v63 = vld [vmem:[#allocation7 + $0xe8] sm:$0xff]  ;;  %v803_v2 = vpack.c.bf16 %v451_v60, %v450_v58 }
  0xa8   : > { %v366_v1 = vld [vmem:[#allocation7 + $0xf8] sm:$0xff]  ;;  %v778_v3 = vpack.c.bf16 %v361_v62, %v359_v61  ;;  %v452_v4 = vld [vmem:[#allocation8 + $0x70] sm:$0xff]  ;;  %v363_v7 = vld [vmem:[#allocation7 + $0xe0] sm:$0xff] }
  0xa9   : > { %795 = vmatpush3.bf16.msra.mxu1 %v794_v38  ;;  %v780_v5 = vpack.c.bf16 %v366_v1, %v364_v63  ;;  %v453_v6 = vld [vmem:[#allocation8 + $0x78] sm:$0xff]  ;;  %v365_v8 = vld [vmem:[#allocation7 + $0xf0] sm:$0xff]  ;;  %v334_v12 = vld [vmem:[%s282_s19] sm:$0xff]  ;;  %s1015_s19 = scalar_lea.vmem %s1014_s3, 256 }
  0xaa   : > { %767 = vmatpush1.bf16.msra.mxu0 %v766_v39  ;;  %796 = vmatprep.subr.bf16.mxu1 %v1097_v0  ;;  %v806_v9 = vpack.c.bf16 %v453_v6, %v452_v4  ;;  %v782_v10 = vpack.c.bf16 %v365_v8, %v363_v7  ;;  %v333_v11 = vld [vmem:[%s291_s30] sm:$0xff]  ;;  %v693_v15 = vld [vmem:[%s1432_s4] ss:$0 sm:$0xff]  ;;  %p1017_p7 = scmp.lt.s32.totalorder %s1015_s19, %s1009_s7 }
  0xab   : > { %769 = vmatprep.subr.bf16.mxu0 %v768_v41  ;;  %v695_v20 = vld [vmem:[%s1433_s5] ss:$0 sm:$0xff] }
  0xac   : > { %p1018_p3 = por %p1017_p7, %p1016_p4 }
  0xad   : > { %798 = vmatpush3.bf16.msra.mxu1 %v797_v47 }
  0xae   : > { %771 = vmatpush1.bf16.msra.mxu0 %v770_v48  ;;  %799 = vmatprep.subr.bf16.mxu1 %v1097_v0  ;;  %p1019_p5 = pnand %p1018_p3, %p1012_p10 }
  0xaf   : > { %773 = vmatprep.subr.bf16.mxu0 %v772_v50 }
  0xb1   : > { %801 = vmatpush3.bf16.msra.mxu1 %v800_v56 }
  0xb2   : > { %775 = vmatpush1.bf16.msra.mxu0 %v774_v57  ;;  %802 = vmatprep.subr.bf16.mxu1 %v1097_v0 }
  0xb3   : > { %777 = vmatprep.subr.bf16.mxu0 %v776_v59 }
  0xb5   : > { %804 = vmatpush3.bf16.msra.mxu1 %v803_v2 }
  0xb6   : > { %779 = vmatpush1.bf16.msra.mxu0 %v778_v3  ;;  %805 = vmatprep.subr.bf16.mxu1 %v1097_v0 }
  0xb7   : > { %781 = vmatprep.subr.bf16.mxu0 %v780_v5 }
  0xb9   : > { %807 = vmatpush3.bf16.msra.mxu1 %v806_v9 }
  0xba   : > { %783 = vmatpush1.bf16.msra.mxu0 %v782_v10 }
  0xbc   : > { %750 = vmatmul.mubr.f32.vlgmr.msra.gmra.mrb[0].mxu1 %v333_v11 }
  0xbd   : > { %432 = vmatmul.mubr.f32.vlgmr.msra.gmra.mrb[0].mxu0 %v334_v12 }
 0x18f   : > { %v520_v13 = vpop.f32.mrb[0].mxu1 }
 0x190   : > { %v433_v14 = vpop.f32.mrb[0].mxu0  ;;  %v751_v17 = vpop.f32.mrb[1].mxu1 }
 0x191   : > { %v524_v16 = vadd.f32 %v520_v13, %v433_v14  ;;  %v435_v0 = vpop.f32.mrb[1].mxu0 }
 0x192   : > { %v546_v21 = vadd.f32 %v695_v20, %v435_v0 }
 0x193   : > { %v532_v18 = vadd.f32 %v693_v15, %v524_v16 }
 0x195   : > { %v694_v19 = vmul.f32 -1.442695, %v532_v18 }
 0x197   : > { %887 = vpow2.f32 %v694_v19 }
 0x198   : > { %889 = vtanh.f32 %v546_v21 }
 0x1a1   : > { %v888_v22 = vpop.eup %887 }
 0x1a2   : > { %v536_v23 = vadd.f32 1.0, %v888_v22  ;;  %v890_v24 = vpop.eup %889 }
 0x1a3   : > { %v548_v25 = vsub.f32 %v333_v11, %v890_v24 }
 0x1a4   : > { %891 = vrcp.f32 %v536_v23 }
 0x1ae   : > { %v892_v26 = vpop.eup %891 }
 0x1af   : > { %v549_v27 = vmul.f32 %v892_v26, %v548_v25 }
 0x1b1   : > { %v550_v28 = vadd.f32 %v890_v24, %v549_v27 }
 0x1b3   : > { %551 = vst [vmem:[%s332_s13] sm:$0xff] %v550_v28 }
 0x1b4   : > { %1022 = shalt.err (!%p1019_p5)
}
 0x1b5   : > { %s1023_s14 = scalar_lea.hbm %s1384_s17, 128  ;;  %s1027_s30 = scalar_lea.hbm %s1434_s6, 256 }
 0x1b6   : > { %p1024_p1 = scmp.ne.s32.totalorder %s1384_s17, %s1023_s14  ;;  %p1028_p0 = scmp.lt.u32.totalorder %s1384_s17, %s1434_s6 }
 0x1b7   : > { %p1029_p9 = scmp.lt.u32.totalorder %s1027_s30, %s1023_s14  ;;  %p1031_p2 = scmp.lt.u32.totalorder %s1023_s14, %s1384_s17 }
 0x1b8   : > { %p1025_p8 = pnand %p1024_p1, %p1457_p13 }
 0x1b9   : > { %p1030_p12 = por %p1029_p9, %p1028_p0 }
 0x1ba   : > { %p1026_p11 = pneg %p1025_p8 }
 0x1bb   : > { %p1032_p6 = por %p1031_p2, %p1030_p12 }
 0x1bd   : > { %p1033_p10 = pnand %p1032_p6, %p1026_p11 }
 0x1bf   : > { %1036 = shalt.err (!%p1033_p10)
}
 0x1c0   : > { %820 = dma.vmem_to_hbm [thread:$0]  (%p1457_p13), %s1386_s11, 128, %s1384_s17, %s553_s9  }
 0x1c1 PF: > { %s578_s15 = sand.u32 1, %s1075_s21   ;;  %p1458_p4 = scmp.ne.s32.totalorder %s1442_s28, 0 }
 0x1c2   : > { %p1459_p7 = scmp.ge.s32.totalorder %s1087_s24, 2  ;;  %s579_s8 = scalar_lea.sflag [#allocation4], %s578_s15 }
 0x1c4   : > { %p837_p3 = pnand %p1459_p7, %p1458_p4 }
 0x1c6   : > { %1070 = dma.done.wait (!%p837_p3), %s579_s8, 128  }
 0x1c7   : > { %1072 = vsyncadd (!%p837_p3), %s579_s8, 4294967168  ;;  %s1460_s2 = sld [smem:[#allocation16_spill]]  ;;  %p23_p5 = scmp.ge.s32.totalorder %s1246_s26, 4  }
 0x1c8   : > { %s1461_s21 = smov %s1079_s22  ;;  %s1462_s22 = smov %s1083_s23 }
 0x1c9   : > { %s1464_s24 = smov %s1246_s26  ;;  %25 = sbr.rel (!%p23_p5) target bundleno = 11 (0xb), region = 110 }
 0x1cd   : > { %s1463_s23 = smov %s1460_s2 }
 0x1d0   :  { %584 = vsyncpa [#allocation3], 1 }
 0x1d1   :  { %586 = vsyncpa [#allocation3 + $0x1], 1 }
 0x1d2   :  { %587 = vsyncpa [#allocation6], 1 }
 0x1d3   :  { %589 = vsyncpa [#allocation6 + $0x1], 1 }
 0x1d4   :  { %590 = vsyncpa [#allocation9], 1 }
 0x1d5   :  { %591 = vsyncpa [#allocation4], 1 }
 0x1d6   :  { %593 = vsyncpa [#allocation4 + $0x1], 1 }

</bundles_post_ra>
